<compile_context>
chip_gen: v6e
topology: v6e:2x2x1
jax: 0.10.0
libtpu: 0.0.40
codegen_flags: <defaults>
</compile_context>

<pallas_src>
import functools

import jax
import jax.numpy as jnp
import numpy as np
from jax import lax
from jax.experimental import pallas as pl
from jax.experimental.pallas import tpu as pltpu


def _banded_conv_weights(w_hwio, width, dilation, dtype):
    """Fold the W-direction taps (and W zero-padding) of a KxK 'same' conv
    (padding=dilation, rhs_dilation=dilation) into K banded matrices.

    Returns B of shape (K, width*Cin, width*Cout) such that
        conv(x)[h].reshape(width*Cout) ==
            sum_kh  x_hpad[h + kh*dilation].reshape(width*Cin) @ B[kh]
    where x_hpad is x zero-padded by `dilation` rows in H only (the W padding is
    encoded as missing bands in B).
    """
    K, _, Cin, Cout = w_hwio.shape
    sel = np.zeros((K, width, width), np.float32)
    for kw in range(K):
        for wo in range(width):
            wi = wo + kw * dilation - dilation
            if 0 <= wi < width:
                sel[kw, wi, wo] = 1.0
    # B[kh, wi*Cin + ci, wo*Cout + co] = sum_kw sel[kw, wi, wo] * w[kh, kw, ci, co]
    b = jnp.einsum("kvw,hkio->hviwo", jnp.asarray(sel), w_hwio)
    return b.reshape(K, width * Cin, width * Cout).astype(dtype)


def _resblock_kernel(x_ref, b1_ref, b2_ref, scale_ref, shift_ref, o_ref,
                     pad1_ref, pad2_ref, *, ksize, d1, d2):
    # x_ref:    (1, H, W*C)   f32, lane-dense
    # b1_ref:   (K, W*C, W*C) banded conv1 weights (mxu dtype)
    # b2_ref:   (K, W*C, W*C) banded conv2 weights (mxu dtype)
    # scale/shift: (1, W*C)   folded eval-mode BatchNorm, tiled over W
    # o_ref:    (1, H, W*C)   f32, lane-dense
    # pad1_ref: (H + 2*d1, W*C)  VMEM scratch (mxu dtype)
    # pad2_ref: (H + 2*d2, W*C)  VMEM scratch (mxu dtype)
    _, H, WC = x_ref.shape

    x = x_ref[0]                                            # (H, W*C), residual identity

    # ---- bn1 (eval, folded) + relu1 : f32, lane-aligned VPU work ----
    h1 = jnp.maximum(x * scale_ref[...] + shift_ref[...], 0.0)

    # ---- conv1: zero only the H halo rows, write interior once ----
    pad1_ref[0:d1, :] = jnp.zeros((d1, WC), pad1_ref.dtype)
    pad1_ref[d1 + H:d1 + H + d1, :] = jnp.zeros((d1, WC), pad1_ref.dtype)
    pad1_ref[d1:d1 + H, :] = h1.astype(pad1_ref.dtype)

    acc = jnp.zeros((H, WC), jnp.float32)
    for kh in range(ksize):                                 # K accumulating MXU matmuls
        acc += jnp.dot(pad1_ref[kh * d1:kh * d1 + H, :], b1_ref[kh],
                       preferred_element_type=jnp.float32)

    # ---- dropout (p = 0.0 -> identity) + relu2 ----
    h2 = jnp.maximum(acc, 0.0)

    # ---- conv2 ----
    pad2_ref[0:d2, :] = jnp.zeros((d2, WC), pad2_ref.dtype)
    pad2_ref[d2 + H:d2 + H + d2, :] = jnp.zeros((d2, WC), pad2_ref.dtype)
    pad2_ref[d2:d2 + H, :] = h2.astype(pad2_ref.dtype)

    acc2 = jnp.zeros((H, WC), jnp.float32)
    for kh in range(ksize):
        acc2 += jnp.dot(pad2_ref[kh * d2:kh * d2 + H, :], b2_ref[kh],
                        preferred_element_type=jnp.float32)

    # ---- residual add (f32) + lane-dense store ----
    o_ref[0] = (acc2 + x).astype(o_ref.dtype)


def resblock_pallas(x, w1, w2, gamma, beta, running_mean, running_var, *,
                    dilation1=1, dilation2=1, eps=1e-5, mxu_dtype=jnp.float32):
    """x: (N, H, W, Cin) f32;  w1: (K,K,Cin,Cmid);  w2: (K,K,Cmid,Cmid)  (HWIO)."""
    N, H, W, Cin = x.shape
    K = w1.shape[0]
    Cmid = w1.shape[-1]
    assert Cmid == Cin, "residual add requires planes == inplanes"
    assert K == 3, "padding=dilation 'same' conv (with residual) requires kernel_size == 3"
    WC = W * Cin

    # Fold eval-mode BatchNorm into per-channel scale/shift, tiled to lane-dense rows.
    inv_std = gamma / jnp.sqrt(running_var + eps)
    scale_row = jnp.tile(inv_std, W).reshape(1, WC).astype(jnp.float32)
    shift_row = jnp.tile(beta - running_mean * inv_std, W).reshape(1, WC).astype(jnp.float32)

    # Fold W taps + W zero padding into banded weight matrices (MXU operand dtype).
    b1 = _banded_conv_weights(w1, W, dilation1, mxu_dtype)   # (K, W*Cin, W*Cmid)
    b2 = _banded_conv_weights(w2, W, dilation2, mxu_dtype)   # (K, W*Cmid, W*Cmid)

    x_dense = x.reshape(N, H, WC)                            # contiguous -> free reshape

    kernel = functools.partial(_resblock_kernel, ksize=K, d1=dilation1, d2=dilation2)

    itemsize = jnp.dtype(mxu_dtype).itemsize
    cost = pl.CostEstimate(
        flops=2 * 2 * N * K * H * WC * WC,                   # two convs, K matmuls each
        transcendentals=0,
        bytes_accessed=2 * N * H * WC * 4                    # x in + out
        + (b1.size + b2.size) * itemsize + 2 * WC * 4)

    out_dense = pl.pallas_call(
        kernel,
        out_shape=jax.ShapeDtypeStruct((N, H, WC), jnp.float32),
        grid=(N,),
        in_specs=[
            pl.BlockSpec((1, H, WC), lambda n: (n, 0, 0)),
            pl.BlockSpec((K, WC, WC), lambda n: (0, 0, 0)),
            pl.BlockSpec((K, WC, WC), lambda n: (0, 0, 0)),
            pl.BlockSpec((1, WC), lambda n: (0, 0)),
            pl.BlockSpec((1, WC), lambda n: (0, 0)),
        ],
        out_specs=pl.BlockSpec((1, H, WC), lambda n: (n, 0, 0)),
        scratch_shapes=[
            pltpu.VMEM((H + 2 * dilation1, WC), mxu_dtype),
            pltpu.VMEM((H + 2 * dilation2, WC), mxu_dtype),
        ],
        compiler_params=pltpu.CompilerParams(
            dimension_semantics=("parallel",),
            vmem_limit_bytes=32 * 1024 * 1024),
        cost_estimate=cost,
    )(x_dense, b1, b2, scale_row, shift_row)

    return out_dense.reshape(N, H, W, Cmid)


def resblock_reference(x, w1, w2, gamma, beta, running_mean, running_var,
                       *, dilation1=1, dilation2=1, eps=1e-5):
    """Pure-JAX reference (NHWC), mirrors the PyTorch forward in eval mode."""
    h = (x - running_mean) / jnp.sqrt(running_var + eps) * gamma + beta
    h = jnp.maximum(h, 0.0)
    dn = ("NHWC", "HWIO", "NHWC")
    h = lax.conv_general_dilated(h, w1, (1, 1),
                                 [(dilation1, dilation1)] * 2,
                                 rhs_dilation=(dilation1, dilation1),
                                 dimension_numbers=dn)
    h = jnp.maximum(h, 0.0)
    h = lax.conv_general_dilated(h, w2, (1, 1),
                                 [(dilation2, dilation2)] * 2,
                                 rhs_dilation=(dilation2, dilation2),
                                 dimension_numbers=dn)
    return h + x


if __name__ == "__main__":
    # Small shapes: batch=2, channels=8 (inplanes == planes), spatial=16, kernel=3.
    # W * C = 128 -> the lane-dense layout is exactly one vreg lane-width wide.
    N, H, W, C, K = 2, 16, 16, 8, 3

    key = jax.random.PRNGKey(0)
    kx, kw1, kw2, kg, kb, km, kv = jax.random.split(key, 7)

    x = jax.random.normal(kx, (N, H, W, C), dtype=jnp.float32)
    w1 = jax.random.normal(kw1, (K, K, C, C), dtype=jnp.float32) * 0.1
    w2 = jax.random.normal(kw2, (K, K, C, C), dtype=jnp.float32) * 0.1
    gamma = jax.random.normal(kg, (C,), dtype=jnp.float32) * 0.1 + 1.0
    beta = jax.random.normal(kb, (C,), dtype=jnp.float32) * 0.1
    running_mean = jax.random.normal(km, (C,), dtype=jnp.float32) * 0.1
    running_var = jax.random.uniform(kv, (C,), dtype=jnp.float32,
                                     minval=0.5, maxval=1.5)

    # 1) f32 MXU operands: matches the f32 XLA reference tightly.
    ref = resblock_reference(x, w1, w2, gamma, beta, running_mean, running_var)
    out = jax.block_until_ready(
        resblock_pallas(x, w1, w2, gamma, beta, running_mean, running_var))
    np.testing.assert_allclose(np.asarray(out), np.asarray(ref), rtol=1e-4, atol=1e-4)

    # 2) dilation handling (dilation1=2) exercises the banded-weight construction.
    ref_d = resblock_reference(x, w1, w2, gamma, beta, running_mean, running_var,
                               dilation1=2, dilation2=1)
    out_d = jax.block_until_ready(
        resblock_pallas(x, w1, w2, gamma, beta, running_mean, running_var,
                        dilation1=2, dilation2=1))
    np.testing.assert_allclose(np.asarray(out_d), np.asarray(ref_d), rtol=1e-4, atol=1e-4)

    # 3) bf16 MXU-operand fast path (v6e/v7x); f32 accumulation + f32 elementwise.
    out_bf16 = jax.block_until_ready(
        resblock_pallas(x, w1, w2, gamma, beta, running_mean, running_var,
                        mxu_dtype=jnp.bfloat16))
    np.testing.assert_allclose(np.asarray(out_bf16), np.asarray(ref),
                               rtol=5e-2, atol=5e-2)

    print("KERNEL_OK")
</pallas_src>

<mosaic_0001>
module attributes {stable_mosaic.version = 11 : i64} {
  func.func @_resblock_kernel(%arg0: i32, %arg1: memref<1x16x128xf32, #tpu.memory_space<vmem>>, %arg2: memref<3x128x128xf32, #tpu.memory_space<vmem>>, %arg3: memref<3x128x128xf32, #tpu.memory_space<vmem>>, %arg4: memref<1x128xf32, #tpu.memory_space<vmem>>, %arg5: memref<1x128xf32, #tpu.memory_space<vmem>>, %arg6: memref<1x16x128xf32, #tpu.memory_space<vmem>>, %arg7: memref<18x128xf32, #tpu.memory_space<vmem>>, %arg8: memref<18x128xf32, #tpu.memory_space<vmem>>) attributes {dimension_semantics = [#tpu.dimension_semantics<parallel>], iteration_bounds = array<i64: 2>, scalar_prefetch = 0 : i64, scratch_operands = 2 : i64, tpu.core_type = #tpu.core_type<tc>, window_params = [{transform_indices = @transform_0, window_bounds = array<i64: 1, 16, 128>}, {pipeline_mode = #tpu.pipeline_mode<synchronous>, transform_indices = @transform_1, window_bounds = array<i64: 3, 128, 128>}, {pipeline_mode = #tpu.pipeline_mode<synchronous>, transform_indices = @transform_2, window_bounds = array<i64: 3, 128, 128>}, {pipeline_mode = #tpu.pipeline_mode<synchronous>, transform_indices = @transform_3, window_bounds = array<i64: 1, 128>}, {pipeline_mode = #tpu.pipeline_mode<synchronous>, transform_indices = @transform_4, window_bounds = array<i64: 1, 128>}, {transform_indices = @transform_5, window_bounds = array<i64: 1, 16, 128>}]} {
    %c0 = arith.constant 0 : index
    %c0_0 = arith.constant 0 : index
    %c0_1 = arith.constant 0 : index
    %0 = vector.load %arg1[%c0, %c0_0, %c0_1] : memref<1x16x128xf32, #tpu.memory_space<vmem>>, vector<1x16x128xf32>
    %1 = vector.shape_cast %0 : vector<1x16x128xf32> to vector<16x128xf32>
    %c0_2 = arith.constant 0 : index
    %c0_3 = arith.constant 0 : index
    %2 = vector.load %arg4[%c0_2, %c0_3] : memref<1x128xf32, #tpu.memory_space<vmem>>, vector<1x128xf32>
    %3 = vector.broadcast %2 : vector<1x128xf32> to vector<16x128xf32>
    %4 = arith.mulf %1, %3 : vector<16x128xf32>
    %c0_4 = arith.constant 0 : index
    %c0_5 = arith.constant 0 : index
    %5 = vector.load %arg5[%c0_4, %c0_5] : memref<1x128xf32, #tpu.memory_space<vmem>>, vector<1x128xf32>
    %6 = vector.broadcast %5 : vector<1x128xf32> to vector<16x128xf32>
    %7 = arith.addf %4, %6 : vector<16x128xf32>
    %cst = arith.constant 0.000000e+00 : f32
    %8 = vector.broadcast %cst : f32 to vector<16x128xf32>
    %9 = arith.maximumf %7, %8 : vector<16x128xf32>
    %cst_6 = arith.constant 0.000000e+00 : f32
    %10 = vector.broadcast %cst_6 : f32 to vector<1x128xf32>
    %c0_7 = arith.constant 0 : index
    %c0_8 = arith.constant 0 : index
    %11 = vector.load %arg7[%c0_7, %c0_8] : memref<18x128xf32, #tpu.memory_space<vmem>>, vector<1x128xf32>
    tpu.vector_store %arg7[%c0_7, %c0_8], %10 {strides = array<i32>} : memref<18x128xf32, #tpu.memory_space<vmem>>, vector<1x128xf32>,
    %cst_9 = arith.constant 0.000000e+00 : f32
    %12 = vector.broadcast %cst_9 : f32 to vector<1x128xf32>
    %c17 = arith.constant 17 : index
    %c0_10 = arith.constant 0 : index
    %13 = vector.load %arg7[%c17, %c0_10] : memref<18x128xf32, #tpu.memory_space<vmem>>, vector<1x128xf32>
    tpu.vector_store %arg7[%c17, %c0_10], %12 {strides = array<i32>} : memref<18x128xf32, #tpu.memory_space<vmem>>, vector<1x128xf32>,
    %c1 = arith.constant 1 : index
    %c0_11 = arith.constant 0 : index
    %14 = vector.load %arg7[%c1, %c0_11] : memref<18x128xf32, #tpu.memory_space<vmem>>, vector<16x128xf32>
    tpu.vector_store %arg7[%c1, %c0_11], %9 {strides = array<i32>} : memref<18x128xf32, #tpu.memory_space<vmem>>, vector<16x128xf32>,
    %cst_12 = arith.constant 0.000000e+00 : f32
    %15 = vector.broadcast %cst_12 : f32 to vector<16x128xf32>
    %c0_13 = arith.constant 0 : index
    %c0_14 = arith.constant 0 : index
    %16 = vector.load %arg7[%c0_13, %c0_14] : memref<18x128xf32, #tpu.memory_space<vmem>>, vector<16x128xf32>
    %c0_15 = arith.constant 0 : index
    %c0_16 = arith.constant 0 : index
    %c0_17 = arith.constant 0 : index
    %17 = vector.load %arg2[%c0_15, %c0_16, %c0_17] : memref<3x128x128xf32, #tpu.memory_space<vmem>>, vector<1x128x128xf32>
    %18 = vector.shape_cast %17 : vector<1x128x128xf32> to vector<128x128xf32>
    %cst_18 = arith.constant dense<0.000000e+00> : vector<16x128xf32>
    %19 = tpu.matmul %16, %18, %cst_18 {dimension_numbers = #tpu.dot_dimension_numbers<[1], [0], [0], [1], [0, 0, 1, 1], [], []>} : vector<16x128xf32>, vector<128x128xf32>, vector<16x128xf32> -> vector<16x128xf32>
    %20 = arith.addf %15, %19 : vector<16x128xf32>
    %c1_19 = arith.constant 1 : index
    %c0_20 = arith.constant 0 : index
    %21 = vector.load %arg7[%c1_19, %c0_20] : memref<18x128xf32, #tpu.memory_space<vmem>>, vector<16x128xf32>
    %c1_21 = arith.constant 1 : index
    %c0_22 = arith.constant 0 : index
    %c0_23 = arith.constant 0 : index
    %22 = vector.load %arg2[%c1_21, %c0_22, %c0_23] : memref<3x128x128xf32, #tpu.memory_space<vmem>>, vector<1x128x128xf32>
    %23 = vector.shape_cast %22 : vector<1x128x128xf32> to vector<128x128xf32>
    %cst_24 = arith.constant dense<0.000000e+00> : vector<16x128xf32>
    %24 = tpu.matmul %21, %23, %cst_24 {dimension_numbers = #tpu.dot_dimension_numbers<[1], [0], [0], [1], [0, 0, 1, 1], [], []>} : vector<16x128xf32>, vector<128x128xf32>, vector<16x128xf32> -> vector<16x128xf32>
    %25 = arith.addf %20, %24 : vector<16x128xf32>
    %c2 = arith.constant 2 : index
    %c0_25 = arith.constant 0 : index
    %26 = vector.load %arg7[%c2, %c0_25] : memref<18x128xf32, #tpu.memory_space<vmem>>, vector<16x128xf32>
    %c2_26 = arith.constant 2 : index
    %c0_27 = arith.constant 0 : index
    %c0_28 = arith.constant 0 : index
    %27 = vector.load %arg2[%c2_26, %c0_27, %c0_28] : memref<3x128x128xf32, #tpu.memory_space<vmem>>, vector<1x128x128xf32>
    %28 = vector.shape_cast %27 : vector<1x128x128xf32> to vector<128x128xf32>
    %cst_29 = arith.constant dense<0.000000e+00> : vector<16x128xf32>
    %29 = tpu.matmul %26, %28, %cst_29 {dimension_numbers = #tpu.dot_dimension_numbers<[1], [0], [0], [1], [0, 0, 1, 1], [], []>} : vector<16x128xf32>, vector<128x128xf32>, vector<16x128xf32> -> vector<16x128xf32>
    %30 = arith.addf %25, %29 : vector<16x128xf32>
    %cst_30 = arith.constant 0.000000e+00 : f32
    %31 = vector.broadcast %cst_30 : f32 to vector<16x128xf32>
    %32 = arith.maximumf %30, %31 : vector<16x128xf32>
    %cst_31 = arith.constant 0.000000e+00 : f32
    %33 = vector.broadcast %cst_31 : f32 to vector<1x128xf32>
    %c0_32 = arith.constant 0 : index
    %c0_33 = arith.constant 0 : index
    %34 = vector.load %arg8[%c0_32, %c0_33] : memref<18x128xf32, #tpu.memory_space<vmem>>, vector<1x128xf32>
    tpu.vector_store %arg8[%c0_32, %c0_33], %33 {strides = array<i32>} : memref<18x128xf32, #tpu.memory_space<vmem>>, vector<1x128xf32>,
    %cst_34 = arith.constant 0.000000e+00 : f32
    %35 = vector.broadcast %cst_34 : f32 to vector<1x128xf32>
    %c17_35 = arith.constant 17 : index
    %c0_36 = arith.constant 0 : index
    %36 = vector.load %arg8[%c17_35, %c0_36] : memref<18x128xf32, #tpu.memory_space<vmem>>, vector<1x128xf32>
    tpu.vector_store %arg8[%c17_35, %c0_36], %35 {strides = array<i32>} : memref<18x128xf32, #tpu.memory_space<vmem>>, vector<1x128xf32>,
    %c1_37 = arith.constant 1 : index
    %c0_38 = arith.constant 0 : index
    %37 = vector.load %arg8[%c1_37, %c0_38] : memref<18x128xf32, #tpu.memory_space<vmem>>, vector<16x128xf32>
    tpu.vector_store %arg8[%c1_37, %c0_38], %32 {strides = array<i32>} : memref<18x128xf32, #tpu.memory_space<vmem>>, vector<16x128xf32>,
    %cst_39 = arith.constant 0.000000e+00 : f32
    %38 = vector.broadcast %cst_39 : f32 to vector<16x128xf32>
    %c0_40 = arith.constant 0 : index
    %c0_41 = arith.constant 0 : index
    %39 = vector.load %arg8[%c0_40, %c0_41] : memref<18x128xf32, #tpu.memory_space<vmem>>, vector<16x128xf32>
    %c0_42 = arith.constant 0 : index
    %c0_43 = arith.constant 0 : index
    %c0_44 = arith.constant 0 : index
    %40 = vector.load %arg3[%c0_42, %c0_43, %c0_44] : memref<3x128x128xf32, #tpu.memory_space<vmem>>, vector<1x128x128xf32>
    %41 = vector.shape_cast %40 : vector<1x128x128xf32> to vector<128x128xf32>
    %cst_45 = arith.constant dense<0.000000e+00> : vector<16x128xf32>
    %42 = tpu.matmul %39, %41, %cst_45 {dimension_numbers = #tpu.dot_dimension_numbers<[1], [0], [0], [1], [0, 0, 1, 1], [], []>} : vector<16x128xf32>, vector<128x128xf32>, vector<16x128xf32> -> vector<16x128xf32>
    %43 = arith.addf %38, %42 : vector<16x128xf32>
    %c1_46 = arith.constant 1 : index
    %c0_47 = arith.constant 0 : index
    %44 = vector.load %arg8[%c1_46, %c0_47] : memref<18x128xf32, #tpu.memory_space<vmem>>, vector<16x128xf32>
    %c1_48 = arith.constant 1 : index
    %c0_49 = arith.constant 0 : index
    %c0_50 = arith.constant 0 : index
    %45 = vector.load %arg3[%c1_48, %c0_49, %c0_50] : memref<3x128x128xf32, #tpu.memory_space<vmem>>, vector<1x128x128xf32>
    %46 = vector.shape_cast %45 : vector<1x128x128xf32> to vector<128x128xf32>
    %cst_51 = arith.constant dense<0.000000e+00> : vector<16x128xf32>
    %47 = tpu.matmul %44, %46, %cst_51 {dimension_numbers = #tpu.dot_dimension_numbers<[1], [0], [0], [1], [0, 0, 1, 1], [], []>} : vector<16x128xf32>, vector<128x128xf32>, vector<16x128xf32> -> vector<16x128xf32>
    %48 = arith.addf %43, %47 : vector<16x128xf32>
    %c2_52 = arith.constant 2 : index
    %c0_53 = arith.constant 0 : index
    %49 = vector.load %arg8[%c2_52, %c0_53] : memref<18x128xf32, #tpu.memory_space<vmem>>, vector<16x128xf32>
    %c2_54 = arith.constant 2 : index
    %c0_55 = arith.constant 0 : index
    %c0_56 = arith.constant 0 : index
    %50 = vector.load %arg3[%c2_54, %c0_55, %c0_56] : memref<3x128x128xf32, #tpu.memory_space<vmem>>, vector<1x128x128xf32>
    %51 = vector.shape_cast %50 : vector<1x128x128xf32> to vector<128x128xf32>
    %cst_57 = arith.constant dense<0.000000e+00> : vector<16x128xf32>
    %52 = tpu.matmul %49, %51, %cst_57 {dimension_numbers = #tpu.dot_dimension_numbers<[1], [0], [0], [1], [0, 0, 1, 1], [], []>} : vector<16x128xf32>, vector<128x128xf32>, vector<16x128xf32> -> vector<16x128xf32>
    %53 = arith.addf %48, %52 : vector<16x128xf32>
    %54 = arith.addf %53, %1 : vector<16x128xf32>
    %c0_58 = arith.constant 0 : index
    %c0_59 = arith.constant 0 : index
    %c0_60 = arith.constant 0 : index
    %55 = vector.load %arg6[%c0_58, %c0_59, %c0_60] : memref<1x16x128xf32, #tpu.memory_space<vmem>>, vector<1x16x128xf32>
    %56 = vector.shape_cast %55 : vector<1x16x128xf32> to vector<16x128xf32>
    %57 = vector.shape_cast %54 : vector<16x128xf32> to vector<1x16x128xf32>
    tpu.vector_store %arg6[%c0_58, %c0_59, %c0_60], %57 {strides = array<i32>} : memref<1x16x128xf32, #tpu.memory_space<vmem>>, vector<1x16x128xf32>,
    return
  }
  func.func @transform_0(%arg0: i32) -> (i32, i32, i32) {
    %c0_i32 = arith.constant 0 : i32
    %c0_i32_0 = arith.constant 0 : i32
    %c0_i32_1 = arith.constant 0 : i32
    return %arg0, %c0_i32, %c0_i32_0 : i32, i32, i32
  }
  func.func @transform_1(%arg0: i32) -> (i32, i32, i32) {
    %c0_i32 = arith.constant 0 : i32
    %c0_i32_0 = arith.constant 0 : i32
    %c0_i32_1 = arith.constant 0 : i32
    %c0_i32_2 = arith.constant 0 : i32
    return %c0_i32, %c0_i32_0, %c0_i32_1 : i32, i32, i32
  }
  func.func @transform_2(%arg0: i32) -> (i32, i32, i32) {
    %c0_i32 = arith.constant 0 : i32
    %c0_i32_0 = arith.constant 0 : i32
    %c0_i32_1 = arith.constant 0 : i32
    %c0_i32_2 = arith.constant 0 : i32
    return %c0_i32, %c0_i32_0, %c0_i32_1 : i32, i32, i32
  }
  func.func @transform_3(%arg0: i32) -> (i32, i32) {
    %c0_i32 = arith.constant 0 : i32
    %c0_i32_0 = arith.constant 0 : i32
    %c0_i32_1 = arith.constant 0 : i32
    return %c0_i32, %c0_i32_0 : i32, i32
  }
  func.func @transform_4(%arg0: i32) -> (i32, i32) {
    %c0_i32 = arith.constant 0 : i32
    %c0_i32_0 = arith.constant 0 : i32
    %c0_i32_1 = arith.constant 0 : i32
    return %c0_i32, %c0_i32_0 : i32, i32
  }
  func.func @transform_5(%arg0: i32) -> (i32, i32, i32) {
    %c0_i32 = arith.constant 0 : i32
    %c0_i32_0 = arith.constant 0 : i32
    %c0_i32_1 = arith.constant 0 : i32
    return %arg0, %c0_i32, %c0_i32_0 : i32, i32, i32
  }
}

</mosaic_0001>

<bundles_post_ra>
// kernel: tpu_custom_call.1
= control target key start
LH: loop header
LB: loop body
LE: loop exit
PB: predicated region body
PF: predicated region fallthrough
CT: control target
= control target key end

     0   :  { %10 = vsyncpa [#allocation5], 0  ;;  %s1800_s0 = inlined_call_operand.hbm [shape: f32[2,16,128], index: 0, kind: input, shape index: {}]   ;;  %s1801_s1 = inlined_call_operand.hbm [shape: f32[3,128,128], index: 1, kind: input, shape index: {}]   ;;  %s1802_s2 = inlined_call_operand.hbm [shape: f32[3,128,128], index: 2, kind: input, shape index: {}]   ;;  %s1803_s3 = inlined_call_operand.vmem [shape: f32[1,128], index: 3, kind: input, shape index: {}]   ;;  %s1804_s4 = inlined_call_operand.vmem [shape: f32[1,128], index: 4, kind: input, shape index: {}]   ;;  %s1805_s5 = inlined_call_operand.hbm [shape: f32[2,16,128], index: 5, kind: output, shape index: {}]  }
   0x1   :  { %12 = vsyncpa [#allocation5 + $0x1], 0 }
   0x2   :  { %13 = vsyncpa [#allocation8], 0 }
   0x3   :  { %14 = vsyncpa [#allocation6], 0 }
   0x4   :  { %16 = vsyncpa [#allocation6 + $0x1], 0  ;;  %s1581_s18 = smov 0   ;;  %s1583_s19 = smov 0  }
   0x5   :  { %s1585_s20 = smov 0   ;;  %s1587_s21 = smov 0  }
   0x6 LB: > { %s1602_s22 = sadd.s32 4294967295, %s1540_s21   ;;  %s980_s23 = sadd.s32 4294967294, %s1540_s21   ;;  %s1540_s21 = sphi %s1587_s21, %s1828_s21   ;;  %s1536_s20 = sphi %s1585_s20, %s1827_s20   ;;  %s1532_s19 = sphi %s1583_s19, %s1826_s19   ;;  %s1528_s18 = sphi %s1581_s18, %s1825_s18  }
   0x7   : > { %p42_p0 = scmp.ne.s32.totalorder %s1532_s19, %s1528_s18  ;;  %p1806_p1 = scmp.eq.s32.totalorder %s1602_s22, 0 }
   0x8   : > { %p150_p2 = scmp.eq.s32.totalorder %s1602_s22, 1  ;;  %p156_p3 = scmp.eq.s32.totalorder %s980_s23, 1 }
   0x9   : > { %p1611_p4 = por %p1806_p1, %p42_p0  ;;  %p981_p5 = scmp.ge.s32.totalorder %s1540_s21, 1 }
   0xa   : > { %p1616_p6 = por %p156_p3, %p42_p0  ;;  %p163_p7 = scmp.lt.s32.totalorder %s1540_s21, 3 }
   0xb   : > { %s1811_s24 = scalar_select %p1611_p4, 1, 0 }
   0xc   : > { %s1812_s25 = scalar_select %p1616_p6, 1, 0 }
   0xd   : > { %p1621_p8 = pnand %p981_p5, %p163_p7  ;;  %s1542_s27 = smov [#allocation7]  }
   0xe   : > { %s175_s28 = sshll.u32 %s1542_s27, 4  ;;  %s1543_s30 = smov [#allocation9]   ;;  %s176_s28 = int_to_ptr.vmem [resolvable:$true] %s175_s28 }
   0xf   : > { %s1813_s26 = scalar_select %p1621_p8, 1, 0 }
  0x10   : > { %p1332_p9 = pneg %p1621_p8  ;;  %s188_s6 = sshll.u32 %s1543_s30, 4  ;;  %s189_s6 = int_to_ptr.vmem [resolvable:$true] %s188_s6 }
  0x11   : > { %s1403_s7 = scalar_lea.vmem %s176_s28, 6144  ;;  %p1411_p5 = scmp.lt.s32.totalorder %s176_s28, %s176_s28 }
  0x12   : > { %p1630_p11 = pnand %p1332_p9, %p1806_p1  ;;  %p1404_p13 = scmp.ne.s32.totalorder %s176_s28, %s1403_s7 }
  0x13   : > { %p1412_p7 = scmp.lt.s32.totalorder %s1403_s7, %s1403_s7 }
  0x14   : > { %p1394_p12 = pneg %p1630_p11 }
  0x15   : > { %p1413_p10 = por %p1412_p7, %p1411_p5 }
  0x16   : > { %p1406_p0 = pnand %p1404_p13, %p1394_p12 }
  0x18   : > { %p1407_p3 = pneg %p1406_p0 }
  0x1a   : > { %p1414_p9 = pnand %p1413_p10, %p1407_p3 }
  0x1c   : > { %1417 = shalt.err (!%p1414_p9)
}
  0x1d   : > { %s1807_s8 = smov 128   ;;  %s1545_s9 = smov 8  }
  0x1e   : > { %1335 = dma.hbm_to_vmem [thread:$0]  (!%p1630_p11), %s1801_s1, 6144, %s176_s28, [#allocation8], %s1807_s8, %s1807_s8, %s1545_s9  }
  0x1f   : > { %s1429_s12 = scalar_lea.vmem %s189_s6, 6144  ;;  %p1437_p10 = scmp.lt.s32.totalorder %s189_s6, %s189_s6 }
  0x20   : > { %p1430_p13 = scmp.ne.s32.totalorder %s189_s6, %s1429_s12  ;;  %p1438_p3 = scmp.lt.s32.totalorder %s1429_s12, %s1429_s12 }
  0x22   : > { %p1432_p0 = pnand %p1430_p13, %p1394_p12  ;;  %p1439_p7 = por %p1438_p3, %p1437_p10 }
  0x24   : > { %p1433_p5 = pneg %p1432_p0 }
  0x26   : > { %p1440_p9 = pnand %p1439_p7, %p1433_p5 }
  0x28   : > { %1443 = shalt.err (!%p1440_p9)
}
  0x29   : > { %1338 = dma.hbm_to_vmem [thread:$0]  (!%p1630_p11), %s1802_s2, 6144, %s189_s6, [#allocation8], %s1807_s8, %s1807_s8, %s1545_s9  }
  0x2a   : > { %s1659_s15 = sadd.s32 1, %s1540_s21   ;;  %s29_s16 = sadd.s32 1, %s1536_s20 }
  0x2b   : > { %s26_s17 = ssub.s32 %s1540_s21, %s1659_s15  ;;  %p36_p12 = scmp.ne.s32.totalorder %s1536_s20, %s1532_s19 }
  0x2c   : > { %p27_p13 = scmp.eq.s32.totalorder %s26_s17, 0  ;;  %p37_p0 = scmp.eq.s32.totalorder %s1540_s21, 0 }
  0x2d   : > { %p1669_p5 = por %p150_p2, %p36_p12  ;;  %p1349_p10 = scmp.lt.s32.totalorder %s1540_s21, 2 }
  0x2e   : > { %s1675_s27 = scalar_select %p27_p13, %s1536_s20, %s29_s16  }
  0x2f   : > { %s1815_s23 = scalar_select %p1669_p5, 1, 0 }
  0x30   : > { %p38_p3 = por %p37_p0, %p36_p12  ;;  %s208_s28 = sand.u32 1, %s1536_s20  }
  0x31   : > { %s985_s29 = sshll.u32 %s208_s28, 4  ;;  %s1000_s30 = sshll.u32 %s1540_s21, 8 }
  0x32   : > { %s1682_s10 = scalar_lea.hbm %s1800_s0, %s1000_s30  ;;  %s212_s11 = scalar_lea.vmem [#allocation4], %s985_s29 }
  0x33   : > { %s219_s12 = sshll.u32 %s212_s11, 4  ;;  %p1686_p2 = pnand %p1349_p10, %p38_p3  ;;  %s1684_s12 = int_to_ptr.vmem [resolvable:$true] %s219_s12 }
  0x34   : > { %s1690_s14 = scalar_lea.sflag [#allocation5], %s208_s28  ;;  %s1444_s16 = scalar_lea.hbm %s1682_s10, 256 }
  0x35   : > { %p1445_p11 = scmp.ne.s32.totalorder %s1682_s10, %s1444_s16  ;;  %p1446_p7 = pneg %p1686_p2 }
  0x36   : > { %s1449_s29 = scalar_lea.hbm %s1800_s0, 512  ;;  %p1450_p13 = scmp.lt.s32.totalorder %s1682_s10, %s1800_s0 }
  0x37   : > { %p1447_p9 = pnand %p1446_p7, %p1445_p11  ;;  %p1451_p0 = scmp.lt.s32.totalorder %s1449_s29, %s1444_s16 }
  0x39   : > { %p1448_p12 = pneg %p1447_p9  ;;  %p1452_p10 = por %p1451_p0, %p1450_p13 }
  0x3b   : > { %p1453_p3 = pnand %p1452_p10, %p1448_p12 }
  0x3d   : > { %1456 = shalt.err (!%p1453_p3)
}
  0x3e   : > { %s1457_s28 = scalar_lea.vmem %s1684_s12, 256  ;;  %s1546_s11 = smov [#allocation4]  }
  0x3f   : > { %p1458_p1 = scmp.ne.s32.totalorder %s1684_s12, %s1457_s28  ;;  %s1462_s8 = sshll.u32 %s1546_s11, 4  ;;  %s1463_s8 = int_to_ptr.vmem [resolvable:$false] %s1462_s8 }
  0x40   : > { %s1464_s17 = scalar_lea.vmem %s1463_s8, 512  ;;  %p1465_p9 = scmp.lt.s32.totalorder %s1684_s12, %s1463_s8 }
  0x41   : > { %p1460_p6 = pnand %p1458_p1, %p1446_p7  ;;  %p1466_p5 = scmp.lt.s32.totalorder %s1464_s17, %s1457_s28 }
  0x43   : > { %p1461_p11 = pneg %p1460_p6  ;;  %p1467_p4 = por %p1466_p5, %p1465_p9 }
  0x45   : > { %p1468_p8 = pnand %p1467_p4, %p1461_p11 }
  0x47   : > { %1471 = shalt.err (!%p1468_p8)
}
  0x48   : > { %s1817_s16 = smov 128   ;;  %p1818_p1 = scmp.ne.s32.totalorder %s1813_s26, 0 }
  0x49   : > { %1342 = dma.hbm_to_vmem [thread:$0]  (!%p1686_p2), %s1682_s10, 256, %s1684_s12, %s1690_s14, %s1817_s16, %s1817_s16, %s1545_s9  }
  0x4a   : > { %231 = sbr.rel (%p1818_p1) target bundleno = 596 (0x254), region = 40  ;;  %s1717_s30 = sand.u32 (!%p1818_p1), 1, %s1532_s19  }
  0x4b   : > { %s989_s8 = sshll.u32 (!%p1818_p1), %s1717_s30, 4  ;;  %s234_s29 = scalar_lea.sflag (!%p1818_p1), [#allocation5], %s1717_s30 }
  0x4c   : > { %s1723_s13 = scalar_lea.vmem (!%p1818_p1), [#allocation4], %s989_s8  ;;  %p1819_p4 = scmp.ne.s32.totalorder (!%p1818_p1), %s1811_s24, 0 }
  0x4f   : > { %1515 = dma.done.wait (%p1819_p4), %s234_s29, 256  }
  0x50   : > { %1517 = vsyncadd (%p1819_p4), %s234_s29, 4294967040  ;;  %p1820_p6 = scmp.eq.s32.totalorder %s1602_s22, 0 }
  0x52   : > { %1519 = dma.done.wait (%p1820_p6), [#allocation8], 12288   ;;  %p1821_p8 = pmov %p1820_p6 }
  0x53   : > { %v1547_v0 = vmov 0.0   ;;  %v334_v1 = vld [vmem:[#allocation7 + $0xf8] sm:$0xff]  ;;  %v333_v3 = vld [vmem:[#allocation7 + $0xf0] sm:$0xff]  ;;  %v332_v5 = vld [vmem:[#allocation7 + $0xe8] sm:$0xff]  ;;  %s271_s12 = scalar_lea.vmem [#allocation10], %s989_s8  ;;  %s1001_s6 = sshll.u32 %s1602_s22, 8 }
  0x54   : > { %1521 = vsyncadd (%p1821_p8), [#allocation8], 4294955008  ;;  %294 = vst [vmem:[#allocation2] sm:$0x1] %v1547_v0  ;;  %v315_v2 = vld [vmem:[#allocation7 + $0x78] sm:$0xff]  ;;  %1110 = vmatprep.subr.mxu0 %v334_v1  ;;  %v314_v4 = vld [vmem:[#allocation7 + $0x70] sm:$0xff]  ;;  %s1756_s11 = scalar_lea.hbm %s1805_s5, %s1001_s6 }
  0x55   : > { %295 = vst [vmem:[#allocation2 + $0x11] sm:$0x1] %v1547_v0  ;;  %583 = vst [vmem:[#allocation3] sm:$0x1] %v1547_v0  ;;  %1145 = vmatprep.subr.mxu1 %v315_v2  ;;  %1111 = vmatpush3.msra.mxu0 %v334_v1  ;;  %v313_v6 = vld [vmem:[#allocation7 + $0x68] sm:$0xff]  ;;  %v331_v7 = vld [vmem:[#allocation7 + $0xe0] sm:$0xff] }
  0x56   : > { %584 = vst [vmem:[#allocation3 + $0x11] sm:$0x1] %v1547_v0  ;;  %1146 = vmatpush3.msra.mxu1 %v315_v2  ;;  %1112 = vmatprep.subr.mxu0 %v333_v3  ;;  %v312_v8 = vld [vmem:[#allocation7 + $0x60] sm:$0xff]  ;;  %v330_v9 = vld [vmem:[#allocation7 + $0xd8] sm:$0xff]  ;;  %v329_v11 = vld [vmem:[#allocation7 + $0xd0] sm:$0xff]  ;;  %s888_s14 = sshll.u32 %s271_s12, 4  ;;  %s1751_s14 = int_to_ptr.vmem [resolvable:$true] %s888_s14 }
  0x57   : > { %1147 = vmatprep.subr.mxu1 %v314_v4  ;;  %1113 = vmatpush3.msra.mxu0 %v333_v3  ;;  %v311_v10 = vld [vmem:[#allocation7 + $0x58] sm:$0xff]  ;;  %v310_v12 = vld [vmem:[#allocation7 + $0x50] sm:$0xff]  ;;  %v328_v13 = vld [vmem:[#allocation7 + $0xc8] sm:$0xff]  ;;  %s875_s17 = scalar_lea.sflag [#allocation6], %s1717_s30  ;;  %s1472_s22 = scalar_lea.vmem %s1751_s14, 256 }
  0x58   : > { %1148 = vmatpush3.msra.mxu1 %v314_v4  ;;  %1114 = vmatprep.subr.mxu0 %v332_v5  ;;  %v309_v14 = vld [vmem:[#allocation7 + $0x48] sm:$0xff]  ;;  %v1734_v15 = vld [vmem:[%s1723_s13] sm:$0xff]  ;;  %v326_v23 = vld [vmem:[#allocation7 + $0xb8] sm:$0xff]  ;;  %p1473_p5 = scmp.ne.s32.totalorder %s1751_s14, %s1472_s22  ;;  %p1822_p2 = scmp.ne.s32.totalorder %s1815_s23, 0 }
  0x59   : > { %1149 = vmatprep.subr.mxu1 %v313_v6  ;;  %1115 = vmatpush3.msra.mxu0 %v332_v5  ;;  %v993_v16 = vld [vmem:[%s1803_s3] ss:$0 sm:$0xff]  ;;  %v1743_v18 = vld [vmem:[%s1723_s13 + $0x8] sm:$0xff]  ;;  %v327_v19 = vld [vmem:[#allocation7 + $0xc0] sm:$0xff]  ;;  %s1548_s16 = smov [#allocation10]  }
  0x5a   : > { %1150 = vmatpush3.msra.mxu1 %v313_v6  ;;  %1116 = vmatprep.subr.mxu0 %v331_v7  ;;  %v994_v17 = vld [vmem:[%s1804_s4] ss:$0 sm:$0xff]  ;;  %v308_v20 = vld [vmem:[#allocation7 + $0x40] sm:$0xff]  ;;  %v281_v21 = vmul.f32 %v993_v16, %v1734_v15  ;;  %v282_v22 = vmul.f32 %v993_v16, %v1743_v18  ;;  %v307_v24 = vld [vmem:[#allocation7 + $0x38] sm:$0xff]  ;;  %p1474_p7 = pnand %p1473_p5, %p1822_p2  ;;  %s1476_s8 = sshll.u32 %s1548_s16, 4  ;;  %s1477_s8 = int_to_ptr.vmem [resolvable:$false] %s1476_s8 }
  0x5b   : > { %1151 = vmatprep.subr.mxu1 %v312_v8  ;;  %1117 = vmatpush3.msra.mxu0 %v331_v7  ;;  %v325_v27 = vld [vmem:[#allocation7 + $0xb0] sm:$0xff]  ;;  %v324_v31 = vld [vmem:[#allocation7 + $0xa8] sm:$0xff]  ;;  %v323_v33 = vld [vmem:[#allocation7 + $0xa0] sm:$0xff]  ;;  %s1478_s29 = scalar_lea.vmem %s1477_s8, 512  ;;  %p1479_p13 = scmp.lt.s32.totalorder %s1751_s14, %s1477_s8 }
  0x5c   : > { %1152 = vmatpush3.msra.mxu1 %v312_v8  ;;  %1118 = vmatprep.subr.mxu0 %v330_v9  ;;  %v290_v25 = vadd.f32 %v994_v17, %v281_v21  ;;  %v291_v26 = vadd.f32 %v994_v17, %v282_v22  ;;  %v306_v28 = vld [vmem:[#allocation7 + $0x30] sm:$0xff]  ;;  %v305_v32 = vld [vmem:[#allocation7 + $0x28] sm:$0xff]  ;;  %v304_v34 = vld [vmem:[#allocation7 + $0x20] sm:$0xff]  ;;  %p1475_p12 = pneg %p1474_p7  ;;  %p1480_p0 = scmp.lt.s32.totalorder %s1478_s29, %s1472_s22 }
  0x5d   : > { %1153 = vmatprep.subr.mxu1 %v311_v10  ;;  %1119 = vmatpush3.msra.mxu0 %v330_v9  ;;  %v322_v35 = vld [vmem:[#allocation7 + $0x98] sm:$0xff]  ;;  %v321_v37 = vld [vmem:[#allocation7 + $0x90] sm:$0xff]  ;;  %v320_v39 = vld [vmem:[#allocation7 + $0x88] sm:$0xff] }
  0x5e   : > { %1154 = vmatpush3.msra.mxu1 %v311_v10  ;;  %1120 = vmatprep.subr.mxu0 %v329_v11  ;;  %v292_v29 = vmax.f32 %v290_v25, 0.0  ;;  %v293_v30 = vmax.f32 %v291_v26, 0.0  ;;  %v303_v36 = vld [vmem:[#allocation7 + $0x18] sm:$0xff]  ;;  %v302_v38 = vld [vmem:[#allocation7 + $0x10] sm:$0xff]  ;;  %v301_v40 = vld [vmem:[#allocation7 + $0x8] sm:$0xff]  ;;  %p1481_p10 = por %p1480_p0, %p1479_p13 }
  0x5f   : > { %1155 = vmatprep.subr.mxu1 %v310_v12  ;;  %1121 = vmatpush3.msra.mxu0 %v329_v11  ;;  %v319_v41 = vld [vmem:[#allocation7 + $0x80] sm:$0xff]  ;;  %v503_v45 = vld [vmem:[#allocation7 + $0x178] sm:$0xff]  ;;  %v502_v47 = vld [vmem:[#allocation7 + $0x170] sm:$0xff] }
  0x60   : > { %1156 = vmatpush3.msra.mxu1 %v310_v12  ;;  %1122 = vmatprep.subr.mxu0 %v328_v13  ;;  %296 = vst [vmem:[#allocation2 + $0x1] sm:$0xff] %v292_v29  ;;  %297 = vst [vmem:[#allocation2 + $0x9] sm:$0xff] %v293_v30  ;;  %v300_v42 = vld [vmem:[#allocation7] sm:$0xff]  ;;  %v501_v48 = vld [vmem:[#allocation7 + $0x168] sm:$0xff]  ;;  %p1482_p3 = pnand %p1481_p10, %p1475_p12 }
  0x61   : > { %1157 = vmatprep.subr.mxu1 %v309_v14  ;;  %1123 = vmatpush3.msra.mxu0 %v328_v13  ;;  %v500_v49 = vld [vmem:[#allocation7 + $0x160] sm:$0xff]  ;;  %v499_v50 = vld [vmem:[#allocation7 + $0x158] sm:$0xff]  ;;  %v498_v51 = vld [vmem:[#allocation7 + $0x150] sm:$0xff] }
  0x62   : > { %1158 = vmatpush3.msra.mxu1 %v309_v14  ;;  %1124 = vmatprep.subr.mxu0 %v327_v19  ;;  %v497_v52 = vld [vmem:[#allocation7 + $0x148] sm:$0xff]  ;;  %v496_v53 = vld [vmem:[#allocation7 + $0x140] sm:$0xff]  ;;  %v495_v54 = vld [vmem:[#allocation7 + $0x138] sm:$0xff] }
  0x63   : > { %1159 = vmatprep.subr.mxu1 %v308_v20  ;;  %1125 = vmatpush3.msra.mxu0 %v327_v19  ;;  %v494_v55 = vld [vmem:[#allocation7 + $0x130] sm:$0xff]  ;;  %v493_v56 = vld [vmem:[#allocation7 + $0x128] sm:$0xff]  ;;  %v492_v57 = vld [vmem:[#allocation7 + $0x120] sm:$0xff] }
  0x64   : > { %1160 = vmatpush3.msra.mxu1 %v308_v20  ;;  %1126 = vmatprep.subr.mxu0 %v326_v23  ;;  %v491_v58 = vld [vmem:[#allocation7 + $0x118] sm:$0xff]  ;;  %v490_v59 = vld [vmem:[#allocation7 + $0x110] sm:$0xff]  ;;  %v489_v60 = vld [vmem:[#allocation7 + $0x108] sm:$0xff] }
  0x65   : > { %1161 = vmatprep.subr.mxu1 %v307_v24  ;;  %1127 = vmatpush3.msra.mxu0 %v326_v23  ;;  %v488_v61 = vld [vmem:[#allocation7 + $0x100] sm:$0xff]  ;;  %v623_v63 = vld [vmem:[#allocation9 + $0xf8] sm:$0xff]  ;;  %v622_v1 = vld [vmem:[#allocation9 + $0xf0] sm:$0xff] }
  0x66   : > { %1162 = vmatpush3.msra.mxu1 %v307_v24  ;;  %1128 = vmatprep.subr.mxu0 %v325_v27  ;;  %v604_v0 = vld [vmem:[#allocation9 + $0x78] sm:$0xff]  ;;  %v603_v2 = vld [vmem:[#allocation9 + $0x70] sm:$0xff]  ;;  %v621_v3 = vld [vmem:[#allocation9 + $0xe8] sm:$0xff] }
  0x67   : > { %1163 = vmatprep.subr.mxu1 %v306_v28  ;;  %1129 = vmatpush3.msra.mxu0 %v325_v27  ;;  %v298_v43 = vld [vmem:[#allocation2] sm:$0xff]  ;;  %v299_v44 = vld [vmem:[#allocation2 + $0x8] sm:$0xff]  ;;  %v602_v4 = vld [vmem:[#allocation9 + $0x68] sm:$0xff] }
  0x68   : > { %1164 = vmatpush3.msra.mxu1 %v306_v28  ;;  %1130 = vmatprep.subr.mxu0 %v324_v31  ;;  %v485_v46 = vld [vmem:[#allocation2 + $0x2] sm:$0xff]  ;;  %v486_v62 = vld [vmem:[#allocation2 + $0xa] sm:$0xff]  ;;  %v617_v11 = vld [vmem:[#allocation9 + $0xc8] sm:$0xff] }
  0x69   : > { %1165 = vmatprep.subr.mxu1 %v305_v32  ;;  %1131 = vmatpush3.msra.mxu0 %v324_v31  ;;  %v620_v5 = vld [vmem:[#allocation9 + $0xe0] sm:$0xff]  ;;  %v619_v7 = vld [vmem:[#allocation9 + $0xd8] sm:$0xff]  ;;  %v618_v9 = vld [vmem:[#allocation9 + $0xd0] sm:$0xff] }
  0x6a   : > { %1166 = vmatpush3.msra.mxu1 %v305_v32  ;;  %1132 = vmatprep.subr.mxu0 %v323_v33  ;;  %v601_v6 = vld [vmem:[#allocation9 + $0x60] sm:$0xff]  ;;  %v600_v8 = vld [vmem:[#allocation9 + $0x58] sm:$0xff]  ;;  %v599_v10 = vld [vmem:[#allocation9 + $0x50] sm:$0xff] }
  0x6b   : > { %1167 = vmatprep.subr.mxu1 %v304_v34  ;;  %1133 = vmatpush3.msra.mxu0 %v323_v33  ;;  %v598_v12 = vld [vmem:[#allocation9 + $0x48] sm:$0xff]  ;;  %v616_v13 = vld [vmem:[#allocation9 + $0xc0] sm:$0xff]  ;;  %v615_v16 = vld [vmem:[#allocation9 + $0xb8] sm:$0xff] }
  0x6c   : > { %1168 = vmatpush3.msra.mxu1 %v304_v34  ;;  %1134 = vmatprep.subr.mxu0 %v322_v35  ;;  %v597_v14 = vld [vmem:[#allocation9 + $0x40] sm:$0xff]  ;;  %v614_v17 = vld [vmem:[#allocation9 + $0xb0] sm:$0xff]  ;;  %v613_v19 = vld [vmem:[#allocation9 + $0xa8] sm:$0xff] }
  0x6d   : > { %1169 = vmatprep.subr.mxu1 %v303_v36  ;;  %1135 = vmatpush3.msra.mxu0 %v322_v35  ;;  %v612_v20 = vld [vmem:[#allocation9 + $0xa0] sm:$0xff]  ;;  %v611_v21 = vld [vmem:[#allocation9 + $0x98] sm:$0xff]  ;;  %v610_v23 = vld [vmem:[#allocation9 + $0x90] sm:$0xff] }
  0x6e   : > { %1170 = vmatpush3.msra.mxu1 %v303_v36  ;;  %1136 = vmatprep.subr.mxu0 %v321_v37  ;;  %v596_v22 = vld [vmem:[#allocation9 + $0x38] sm:$0xff]  ;;  %v595_v24 = vld [vmem:[#allocation9 + $0x30] sm:$0xff]  ;;  %v609_v25 = vld [vmem:[#allocation9 + $0x88] sm:$0xff] }
  0x6f   : > { %1171 = vmatprep.subr.mxu1 %v302_v38  ;;  %1137 = vmatpush3.msra.mxu0 %v321_v37  ;;  %v594_v26 = vld [vmem:[#allocation9 + $0x28] sm:$0xff]  ;;  %v608_v27 = vld [vmem:[#allocation9 + $0x80] sm:$0xff]  ;;  %v591_v31 = vld [vmem:[#allocation9 + $0x10] sm:$0xff] }
  0x70   : > { %1172 = vmatpush3.msra.mxu1 %v302_v38  ;;  %1138 = vmatprep.subr.mxu0 %v320_v39  ;;  %v593_v28 = vld [vmem:[#allocation9 + $0x20] sm:$0xff]  ;;  %v590_v32 = vld [vmem:[#allocation9 + $0x8] sm:$0xff] }
  0x71   : > { %1173 = vmatprep.subr.mxu1 %v301_v40  ;;  %1139 = vmatpush3.msra.mxu0 %v320_v39  ;;  %v589_v33 = vld [vmem:[#allocation9] sm:$0xff] }
  0x72   : > { %1174 = vmatpush3.msra.mxu1 %v301_v40  ;;  %1140 = vmatprep.subr.mxu0 %v319_v41 }
  0x73   : > { %1175 = vmatprep.subr.mxu1 %v300_v42  ;;  %1141 = vmatpush3.msra.mxu0 %v319_v41 }
  0x74   : > { %1142 = vmatprep.mubr.f32.mxu0 %v292_v29  ;;  %1176 = vmatpush3.msra.mxu1 %v300_v42  ;;  %v792_v29 = vld [vmem:[#allocation9 + $0x178] sm:$0xff] }
  0x75   : > { %1177 = vmatprep.mubr.f32.mxu1 %v298_v43  ;;  %1143 = vmatmul.mubr.f32.vlgmr.msra.gmra.mxu0 %v293_v30  ;;  %v592_v30 = vld [vmem:[#allocation9 + $0x18] sm:$0xff] }
  0x76   : > { %1178 = vmatmul.mubr.f32.vlgmr.msra.gmra.mxu1 %v299_v44  ;;  %1180 = vmatprep.subr.mxu0 %v503_v45 }
  0x77   : > { %1212 = vmatprep.mubr.f32.mxu0 %v485_v46  ;;  %1181 = vmatpush3.msra.mxu0 %v503_v45  ;;  %v791_v46 = vld [vmem:[#allocation9 + $0x170] sm:$0xff] }
  0x78   : > { %1182 = vmatprep.subr.mxu0 %v502_v47  ;;  %1215 = vmatprep.subr.mxu1 %v623_v63 }
  0x79   : > { %1183 = vmatpush3.msra.mxu0 %v502_v47  ;;  %1216 = vmatpush3.msra.mxu1 %v623_v63  ;;  %v790_v47 = vld [vmem:[#allocation9 + $0x168] sm:$0xff]  ;;  %v777_v63 = vld [vmem:[#allocation9 + $0x100] sm:$0xff] }
  0x7a   : > { %1184 = vmatprep.subr.mxu0 %v501_v48  ;;  %1217 = vmatprep.subr.mxu1 %v622_v1 }
  0x7b   : > { %1185 = vmatpush3.msra.mxu0 %v501_v48  ;;  %1218 = vmatpush3.msra.mxu1 %v622_v1  ;;  %v789_v48 = vld [vmem:[#allocation9 + $0x160] sm:$0xff] }
  0x7c   : > { %1186 = vmatprep.subr.mxu0 %v500_v49  ;;  %1219 = vmatprep.subr.mxu1 %v621_v3 }
  0x7d   : > { %1187 = vmatpush3.msra.mxu0 %v500_v49  ;;  %1220 = vmatpush3.msra.mxu1 %v621_v3  ;;  %v788_v49 = vld [vmem:[#allocation9 + $0x158] sm:$0xff] }
  0x7e   : > { %1188 = vmatprep.subr.mxu0 %v499_v50  ;;  %1221 = vmatprep.subr.mxu1 %v620_v5 }
  0x7f   : > { %1189 = vmatpush3.msra.mxu0 %v499_v50  ;;  %1222 = vmatpush3.msra.mxu1 %v620_v5 }
  0x80   : > { %1190 = vmatprep.subr.mxu0 %v498_v51  ;;  %1223 = vmatprep.subr.mxu1 %v619_v7 }
  0x81   : > { %1191 = vmatpush3.msra.mxu0 %v498_v51  ;;  %1224 = vmatpush3.msra.mxu1 %v619_v7 }
  0x82   : > { %1192 = vmatprep.subr.mxu0 %v497_v52  ;;  %1225 = vmatprep.subr.mxu1 %v618_v9 }
  0x83   : > { %1193 = vmatpush3.msra.mxu0 %v497_v52  ;;  %1226 = vmatpush3.msra.mxu1 %v618_v9 }
  0x84   : > { %1194 = vmatprep.subr.mxu0 %v496_v53  ;;  %1227 = vmatprep.subr.mxu1 %v617_v11 }
  0x85   : > { %1195 = vmatpush3.msra.mxu0 %v496_v53  ;;  %1228 = vmatpush3.msra.mxu1 %v617_v11  ;;  %v787_v53 = vld [vmem:[#allocation9 + $0x150] sm:$0xff] }
  0x86   : > { %1196 = vmatprep.subr.mxu0 %v495_v54  ;;  %1229 = vmatprep.subr.mxu1 %v616_v13 }
  0x87   : > { %1197 = vmatpush3.msra.mxu0 %v495_v54  ;;  %1230 = vmatpush3.msra.mxu1 %v616_v13  ;;  %v786_v54 = vld [vmem:[#allocation9 + $0x148] sm:$0xff] }
  0x88   : > { %1198 = vmatprep.subr.mxu0 %v494_v55  ;;  %1231 = vmatprep.subr.mxu1 %v615_v16 }
  0x89   : > { %1199 = vmatpush3.msra.mxu0 %v494_v55  ;;  %1232 = vmatpush3.msra.mxu1 %v615_v16  ;;  %v785_v55 = vld [vmem:[#allocation9 + $0x140] sm:$0xff] }
  0x8a   : > { %1200 = vmatprep.subr.mxu0 %v493_v56  ;;  %1233 = vmatprep.subr.mxu1 %v614_v17 }
  0x8b   : > { %1201 = vmatpush3.msra.mxu0 %v493_v56  ;;  %1234 = vmatpush3.msra.mxu1 %v614_v17  ;;  %v784_v56 = vld [vmem:[#allocation9 + $0x138] sm:$0xff] }
  0x8c   : > { %1202 = vmatprep.subr.mxu0 %v492_v57  ;;  %1235 = vmatprep.subr.mxu1 %v613_v19 }
  0x8d   : > { %1203 = vmatpush3.msra.mxu0 %v492_v57  ;;  %1236 = vmatpush3.msra.mxu1 %v613_v19  ;;  %v783_v57 = vld [vmem:[#allocation9 + $0x130] sm:$0xff] }
  0x8e   : > { %1204 = vmatprep.subr.mxu0 %v491_v58  ;;  %1237 = vmatprep.subr.mxu1 %v612_v20 }
  0x8f   : > { %1205 = vmatpush3.msra.mxu0 %v491_v58  ;;  %1238 = vmatpush3.msra.mxu1 %v612_v20  ;;  %v782_v58 = vld [vmem:[#allocation9 + $0x128] sm:$0xff] }
  0x90   : > { %1206 = vmatprep.subr.mxu0 %v490_v59  ;;  %1239 = vmatprep.subr.mxu1 %v611_v21 }
  0x91   : > { %1207 = vmatpush3.msra.mxu0 %v490_v59  ;;  %1240 = vmatpush3.msra.mxu1 %v611_v21  ;;  %v781_v59 = vld [vmem:[#allocation9 + $0x120] sm:$0xff] }
  0x92   : > { %1208 = vmatprep.subr.mxu0 %v489_v60  ;;  %1241 = vmatprep.subr.mxu1 %v610_v23 }
  0x93   : > { %1209 = vmatpush3.msra.mxu0 %v489_v60  ;;  %1242 = vmatpush3.msra.mxu1 %v610_v23  ;;  %v780_v60 = vld [vmem:[#allocation9 + $0x118] sm:$0xff] }
  0x94   : > { %1210 = vmatprep.subr.mxu0 %v488_v61  ;;  %1243 = vmatprep.subr.mxu1 %v609_v25 }
  0x95   : > { %1211 = vmatpush3.msra.mxu0 %v488_v61  ;;  %1244 = vmatpush3.msra.mxu1 %v609_v25  ;;  %v779_v61 = vld [vmem:[#allocation9 + $0x110] sm:$0xff] }
  0x96   : > { %1213 = vmatmul.mubr.f32.vlgmr.msra.gmra.mxu0 %v486_v62  ;;  %1250 = vmatprep.subr.mxu0 %v604_v0  ;;  %v778_v62 = vld [vmem:[#allocation9 + $0x108] sm:$0xff] }
  0x97   : > { %1251 = vmatpush3.msra.mxu0 %v604_v0  ;;  %1245 = vmatprep.subr.mxu1 %v608_v27 }
  0x98   : > { %1252 = vmatprep.subr.mxu0 %v603_v2  ;;  %1246 = vmatpush3.msra.mxu1 %v608_v27 }
  0x99   : > { %1253 = vmatpush3.msra.mxu0 %v603_v2  ;;  %1285 = vmatprep.subr.mxu1 %v792_v29 }
  0x9a   : > { %1254 = vmatprep.subr.mxu0 %v602_v4 }
  0x9b   : > { %1255 = vmatpush3.msra.mxu0 %v602_v4 }
  0x9c   : > { %1256 = vmatprep.subr.mxu0 %v601_v6 }
  0x9d   : > { %1257 = vmatpush3.msra.mxu0 %v601_v6 }
  0x9e   : > { %1258 = vmatprep.subr.mxu0 %v600_v8 }
  0x9f   : > { %1259 = vmatpush3.msra.mxu0 %v600_v8 }
  0xa0   : > { %1260 = vmatprep.subr.mxu0 %v599_v10 }
  0xa1   : > { %1261 = vmatpush3.msra.mxu0 %v599_v10 }
  0xa2   : > { %1262 = vmatprep.subr.mxu0 %v598_v12 }
  0xa3   : > { %1263 = vmatpush3.msra.mxu0 %v598_v12 }
  0xa4   : > { %1264 = vmatprep.subr.mxu0 %v597_v14 }
  0xa5   : > { %1265 = vmatpush3.msra.mxu0 %v597_v14 }
  0xa6   : > { %1266 = vmatprep.subr.mxu0 %v596_v22 }
  0xa7   : > { %1267 = vmatpush3.msra.mxu0 %v596_v22 }
  0xa8   : > { %1268 = vmatprep.subr.mxu0 %v595_v24 }
  0xa9   : > { %1269 = vmatpush3.msra.mxu0 %v595_v24 }
  0xaa   : > { %1270 = vmatprep.subr.mxu0 %v594_v26 }
  0xab   : > { %1271 = vmatpush3.msra.mxu0 %v594_v26 }
  0xac   : > { %1272 = vmatprep.subr.mxu0 %v593_v28 }
  0xad   : > { %1273 = vmatpush3.msra.mxu0 %v593_v28 }
  0xae   : > { %1274 = vmatprep.subr.mxu0 %v592_v30 }
  0xaf   : > { %1275 = vmatpush3.msra.mxu0 %v592_v30 }
  0xb0   : > { %1276 = vmatprep.subr.mxu0 %v591_v31 }
  0xb1   : > { %1277 = vmatpush3.msra.mxu0 %v591_v31 }
  0xb2   : > { %1278 = vmatprep.subr.mxu0 %v590_v32 }
  0xb3   : > { %1279 = vmatpush3.msra.mxu0 %v590_v32 }
  0xb4   : > { %1280 = vmatprep.subr.mxu0 %v589_v33 }
  0xb5   : > { %1281 = vmatpush3.msra.mxu0 %v589_v33 }
 0x135   : > { %v1144_v34 = vpop.f32.mrf.mxu0 }
 0x136   : > { %v1179_v35 = vpop.f32.mrf.mxu1 }
 0x137   : > { %v401_v36 = vpop.f32.mrf.mxu0  ;;  %v482_v38 = vadd.f32 %v1179_v35, %v1144_v34 }
 0x138   : > { %v476_v37 = vpop.f32.mrf.mxu1 }
 0x139   : > { %v477_v40 = vadd.f32 %v476_v37, %v401_v36 }
 0x156   : > { %v1214_v39 = vpop.f32.mrf.mxu0 }
 0x157   : > { %v580_v41 = vadd.f32 %v1214_v39, %v482_v38 }
 0x158   : > { %v570_v42 = vpop.f32.mrf.mxu0 }
 0x159   : > { %v582_v43 = vmax.f32 %v580_v41, 0.0  ;;  %v579_v44 = vadd.f32 %v570_v42, %v477_v40 }
 0x15b   : > { %586 = vst [vmem:[#allocation3 + $0x9] sm:$0xff] %v582_v43  ;;  %v581_v45 = vmax.f32 %v579_v44, 0.0 }
 0x15d   : > { %585 = vst [vmem:[#allocation3 + $0x1] sm:$0xff] %v581_v45  ;;  %1247 = vmatprep.mubr.f32.mxu1 %v581_v45 }
 0x15e   : > { %1248 = vmatmul.mubr.f32.vlgmr.msra.gmra.mxu1 %v582_v43 }
 0x15f   : > { %1286 = vmatpush3.msra.mxu1 %v792_v29 }
 0x160   : > { %1287 = vmatprep.subr.mxu1 %v791_v46 }
 0x161   : > { %1288 = vmatpush3.msra.mxu1 %v791_v46 }
 0x162   : > { %1289 = vmatprep.subr.mxu1 %v790_v47  ;;  %v775_v0 = vld [vmem:[#allocation3 + $0xa] sm:$0xff] }
 0x163   : > { %1290 = vmatpush3.msra.mxu1 %v790_v47 }
 0x164   : > { %v587_v50 = vld [vmem:[#allocation3] sm:$0xff]  ;;  %v588_v51 = vld [vmem:[#allocation3 + $0x8] sm:$0xff]  ;;  %1291 = vmatprep.subr.mxu1 %v789_v48 }
 0x165   : > { %v774_v52 = vld [vmem:[#allocation3 + $0x2] sm:$0xff]  ;;  %1282 = vmatprep.mubr.f32.mxu0 %v587_v50  ;;  %1292 = vmatpush3.msra.mxu1 %v789_v48 }
 0x166   : > { %1317 = vmatprep.mubr.f32.mxu1 %v774_v52  ;;  %1283 = vmatmul.mubr.f32.vlgmr.msra.gmra.mxu0 %v588_v51 }
 0x167   : > { %1293 = vmatprep.subr.mxu1 %v788_v49 }
 0x168   : > { %1294 = vmatpush3.msra.mxu1 %v788_v49 }
 0x169   : > { %1295 = vmatprep.subr.mxu1 %v787_v53 }
 0x16a   : > { %1296 = vmatpush3.msra.mxu1 %v787_v53 }
 0x16b   : > { %1297 = vmatprep.subr.mxu1 %v786_v54 }
 0x16c   : > { %1298 = vmatpush3.msra.mxu1 %v786_v54 }
 0x16d   : > { %1299 = vmatprep.subr.mxu1 %v785_v55 }
 0x16e   : > { %1300 = vmatpush3.msra.mxu1 %v785_v55 }
 0x16f   : > { %1301 = vmatprep.subr.mxu1 %v784_v56 }
 0x170   : > { %1302 = vmatpush3.msra.mxu1 %v784_v56 }
 0x171   : > { %1303 = vmatprep.subr.mxu1 %v783_v57 }
 0x172   : > { %1304 = vmatpush3.msra.mxu1 %v783_v57 }
 0x173   : > { %1305 = vmatprep.subr.mxu1 %v782_v58 }
 0x174   : > { %1306 = vmatpush3.msra.mxu1 %v782_v58 }
 0x175   : > { %1307 = vmatprep.subr.mxu1 %v781_v59 }
 0x176   : > { %1308 = vmatpush3.msra.mxu1 %v781_v59 }
 0x177   : > { %1309 = vmatprep.subr.mxu1 %v780_v60 }
 0x178   : > { %1310 = vmatpush3.msra.mxu1 %v780_v60 }
 0x179   : > { %1311 = vmatprep.subr.mxu1 %v779_v61 }
 0x17a   : > { %1312 = vmatpush3.msra.mxu1 %v779_v61 }
 0x17b   : > { %1313 = vmatprep.subr.mxu1 %v778_v62 }
 0x17c   : > { %1314 = vmatpush3.msra.mxu1 %v778_v62 }
 0x17d   : > { %1315 = vmatprep.subr.mxu1 %v777_v63 }
 0x17e   : > { %1316 = vmatpush3.msra.mxu1 %v777_v63 }
 0x17f   : > { %1318 = vmatmul.mubr.f32.vlgmr.msra.gmra.mxu1 %v775_v0 }
 0x21e   : > { %v1249_v1 = vpop.f32.mrf.mxu1 }
 0x220   : > { %v690_v3 = vpop.f32.mrf.mxu1 }
 0x226   : > { %v1284_v2 = vpop.f32.mrf.mxu0 }
 0x227   : > { %v771_v5 = vadd.f32 %v1284_v2, %v1249_v1 }
 0x228   : > { %v765_v4 = vpop.f32.mrf.mxu0 }
 0x229   : > { %v766_v7 = vadd.f32 %v765_v4, %v690_v3 }
 0x23f   : > { %v1319_v6 = vpop.f32.mrf.mxu1 }
 0x240   : > { %v869_v8 = vadd.f32 %v1319_v6, %v771_v5 }
 0x241   : > { %v859_v9 = vpop.f32.mrf.mxu1 }
 0x242   : > { %v871_v10 = vadd.f32 %v869_v8, %v1743_v18  ;;  %v868_v11 = vadd.f32 %v859_v9, %v766_v7 }
 0x244   : > { %873 = vst [vmem:[%s271_s12 + $0x8] sm:$0xff] %v871_v10  ;;  %v870_v12 = vadd.f32 %v868_v11, %v1734_v15 }
 0x246   : > { %872 = vst [vmem:[%s271_s12] sm:$0xff] %v870_v12 }
 0x247   : > { %1485 = shalt.err (!%p1482_p3)
}
 0x248   : > { %s1486_s13 = scalar_lea.hbm %s1756_s11, 256  ;;  %s1490_s9 = scalar_lea.hbm %s1805_s5, 512 }
 0x249   : > { %p1487_p11 = scmp.ne.s32.totalorder %s1756_s11, %s1486_s13  ;;  %p1491_p4 = scmp.lt.s32.totalorder %s1756_s11, %s1805_s5 }
 0x24a   : > { %p1492_p6 = scmp.lt.s32.totalorder %s1490_s9, %s1486_s13 }
 0x24b   : > { %p1488_p9 = pnand %p1487_p11, %p1822_p2 }
 0x24c   : > { %p1493_p8 = por %p1492_p6, %p1491_p4 }
 0x24d   : > { %p1489_p1 = pneg %p1488_p9 }
 0x24f   : > { %p1494_p5 = pnand %p1493_p8, %p1489_p1 }
 0x251   : > { %1497 = shalt.err (!%p1494_p5)
}
 0x252   : > { %s1549_s6 = smov 128   ;;  %s1550_s7 = smov 8  }
 0x253   : > { %1330 = dma.vmem_to_hbm [thread:$0]  (%p1822_p2), %s1751_s14, 256, %s1756_s11, %s875_s17, %s1549_s6, %s1549_s6, %s1550_s7  }
 0x254 PF: > { %s903_s28 = sand.u32 1, %s1528_s18   ;;  %p1823_p7 = scmp.ne.s32.totalorder %s1812_s25, 0 }
 0x255   : > { %p1824_p12 = scmp.ge.s32.totalorder %s1540_s21, 2  ;;  %s904_s22 = scalar_lea.sflag [#allocation6], %s903_s28 }
 0x257   : > { %p1344_p13 = pnand %p1824_p12, %p1823_p7 }
 0x259   : > { %p1345_p0 = pneg %p1344_p13 }
 0x25b   : > { %1523 = dma.done.wait (%p1345_p0), %s904_s22, 256  }
 0x25c   : > { %1525 = vsyncadd (%p1345_p0), %s904_s22, 4294967040  ;;  %p19_p10 = scmp.ge.s32.totalorder %s1659_s15, 4   ;;  %s1825_s18 = smov %s1532_s19 }
 0x25d   : > { %s1826_s19 = smov %s1536_s20  ;;  %s1827_s20 = smov %s1675_s27 }
 0x25e   : > { %s1828_s21 = smov %s1659_s15  ;;  %21 = sbr.rel (!%p19_p10) target bundleno = 6 (0x6), region = 97 }
 0x263   :  { %909 = vsyncpa [#allocation5], 1 }
 0x264   :  { %911 = vsyncpa [#allocation5 + $0x1], 1 }
 0x265   :  { %912 = vsyncpa [#allocation8], 1 }
 0x266   :  { %913 = vsyncpa [#allocation6], 1 }
 0x267   :  { %915 = vsyncpa [#allocation6 + $0x1], 1 }

</bundles_post_ra>
